<compile_context>
chip_gen: v5e
topology: v5e:2x2
jax: 0.10.0
libtpu: 0.0.40
codegen_flags: <defaults>
</compile_context>

<pallas_src>
import functools

import numpy as np
import jax
import jax.numpy as jnp
from jax.experimental import pallas as pl
from jax.experimental.pallas import tpu as pltpu


# ---------------- static hyper-parameters (deterministic, set in-script) ----------------
OUT_DIM = 32
N_G_CROPS = 2
N_M_CROPS = 1
N_ADD_CROPS = 1
N_GM_CROPS = N_G_CROPS + N_M_CROPS              # teacher crops
N_CROPS = N_G_CROPS + N_M_CROPS + N_ADD_CROPS   # student crops
BATCH = 8                                        # samples per crop
STUDENT_TEMP = 0.1
CENTER_MOMENTUM = 0.9
WARMUP_TEACHER_TEMP = 0.04
TEACHER_TEMP = 0.07
WARMUP_TEACHER_TEMP_EPOCHS = 3
NEPOCHS = 10

N_LOSS_TERMS = N_GM_CROPS * (N_CROPS - 1)        # 9 pairs (iq != v)
INV_STUDENT_TEMP = 1.0 / STUDENT_TEMP
LOSS_SCALE = 1.0 / (BATCH * N_LOSS_TERMS)        # folds mean-over-batch and /n_loss_terms
INV_TEACHER_ROWS = 1.0 / (N_GM_CROPS * BATCH)

# The (crops, B, D) reshapes inside the kernel are only copy-free when each crop chunk
# starts on an (8,128) sublane-tile boundary.
assert BATCH % 8 == 0, "BATCH must be a multiple of 8 (sublane tile) for copy-free reshapes"

TEACHER_TEMP_SCHEDULE = np.concatenate(
    (np.linspace(WARMUP_TEACHER_TEMP, TEACHER_TEMP, WARMUP_TEACHER_TEMP_EPOCHS),
     np.ones(NEPOCHS - WARMUP_TEACHER_TEMP_EPOCHS) * TEACHER_TEMP))


def _dino_loss_kernel(student_ref, teacher_ref, center_ref, out_ref, *, inv_teacher_temp):
    """Single-block kernel: everything fits easily in VMEM at these sizes.

    out_ref is (2, OUT_DIM) f32: row 0 = EMA-updated center,
                                 row 1 = loss broadcast across lanes (read lane 0).
    """
    # Keep all math in f32 (v5e VPU/EUP have no bf16 datapath; bandwidth is irrelevant here).
    student = student_ref[...].astype(jnp.float32) * INV_STUDENT_TEMP      # (n_crops*B, D)
    teacher_raw = teacher_ref[...].astype(jnp.float32)                     # (n_gm*B, D)
    center = center_ref[...].astype(jnp.float32)                           # (1, D)

    # ---- teacher: softmax((teacher - center) * inv_temp, axis=-1) ----
    t = (teacher_raw - center) * inv_teacher_temp
    t = t - jnp.max(t, axis=-1, keepdims=True)
    t_exp = jnp.exp(t)
    row_sum = jnp.sum(t_exp, axis=-1, keepdims=True)                       # (n_gm*B, 1)
    # EUP approx reciprocal (separate VLIW slot -> ~free) + one Newton step so the
    # normalization error (~2^-12 raw) does not show up against the exact reference.
    r0 = pl.reciprocal(row_sum, approx=True)
    inv_row_sum = r0 * (2.0 - row_sum * r0)
    q = t_exp * inv_row_sum                                                # (n_gm*B, D)

    # ---- student: shifted logits + per-row logsumexp (log_softmax never materialized) ----
    # Since sum_d q == 1, each pairwise CE term splits as:
    #   sum_d q[iq]*log_p[v] = sum_d q[iq]*s_shift[v] - s_lse[v]
    s_shift = student - jnp.max(student, axis=-1, keepdims=True)           # (n_crops*B, D)
    s_lse = jnp.log(jnp.sum(jnp.exp(s_shift), axis=-1, keepdims=True))     # (n_crops*B, 1)

    # ---- vectorized pairwise cross-entropy (single VPU pass, no MXU) ----
    q3 = q.reshape(N_GM_CROPS, BATCH, OUT_DIM)          # sublane/lane dims preserved
    sh = s_shift.reshape(N_CROPS, BATCH, OUT_DIM)
    q_sum = jnp.sum(q3, axis=0)                         # (B, D)  sum over teacher crops
    sh_sum = jnp.sum(sh, axis=0)                        # (B, D)  sum over student crops
    diag = jnp.sum(q3 * sh[:N_GM_CROPS], axis=0)        # (B, D)  iq == v terms
    term_a = jnp.sum(q_sum * sh_sum - diag)             # sum_{iq, v!=iq, b, d} q*s_shift

    lse_all = jnp.sum(s_lse)                            # sum over all crops & batch
    lse_gm = jnp.sum(s_lse[:N_GM_CROPS * BATCH])        # sum over teacher-indexed crops
    term_b = N_GM_CROPS * lse_all - lse_gm              # sum_{iq, v!=iq, b} s_lse[v, b]

    loss = -(term_a - term_b) * LOSS_SCALE

    # ---- EMA center update (uses raw teacher output) ----
    batch_center = jnp.sum(teacher_raw, axis=0, keepdims=True) * INV_TEACHER_ROWS
    new_center = center * CENTER_MOMENTUM + batch_center * (1.0 - CENTER_MOMENTUM)

    # Single merged output buffer -> one writeback DMA instead of two.
    out_ref[0:1, :] = new_center.astype(out_ref.dtype)
    out_ref[1:2, :] = jnp.broadcast_to(loss, (1, OUT_DIM)).astype(out_ref.dtype)


@functools.partial(jax.jit, static_argnames=("epoch",))
def contrastive_ce_loss(student_output, teacher_output, center, epoch):
    """Returns (scalar total_loss, new_center). epoch is static (indexes numpy schedule)."""
    # epoch is static -> teacher temperature is a trace-time constant baked into the kernel.
    inv_teacher_temp = float(1.0 / TEACHER_TEMP_SCHEDULE[epoch])
    kernel = functools.partial(_dino_loss_kernel, inv_teacher_temp=inv_teacher_temp)

    n_s = N_CROPS * BATCH * OUT_DIM
    n_t = N_GM_CROPS * BATCH * OUT_DIM
    cost = pl.CostEstimate(
        flops=6 * n_t + 5 * n_s + 10 * BATCH * OUT_DIM + 6 * OUT_DIM
              + 4 * (N_GM_CROPS + N_CROPS) * BATCH,
        transcendentals=n_t + n_s + N_CROPS * BATCH + N_GM_CROPS * BATCH,
        # inputs (student, teacher, center) + merged (2, D) output
        bytes_accessed=4 * (n_s + n_t + OUT_DIM + 2 * OUT_DIM),
    )

    out = pl.pallas_call(
        kernel,
        out_shape=jax.ShapeDtypeStruct((2, OUT_DIM), jnp.float32),
        in_specs=[
            pl.BlockSpec(memory_space=pltpu.MemorySpace.VMEM),   # student_output
            pl.BlockSpec(memory_space=pltpu.MemorySpace.VMEM),   # teacher_output
            pl.BlockSpec(memory_space=pltpu.MemorySpace.VMEM),   # center
        ],
        out_specs=pl.BlockSpec(memory_space=pltpu.MemorySpace.VMEM),
        cost_estimate=cost,
    )(student_output, teacher_output, center)

    # Row 0 = EMA-updated center, row 1 lane 0 = loss; caller rebinds the returned center.
    return out[1, 0], out[0:1, :]


def _reference(student_output, teacher_output, center, epoch):
    """Pure-JAX reference mirroring the PyTorch forward."""
    teacher_temp = float(TEACHER_TEMP_SCHEDULE[epoch])
    s = student_output / STUDENT_TEMP
    t = jax.nn.softmax((teacher_output - center) / teacher_temp, axis=-1)
    s_chunks = jnp.split(s, N_CROPS, axis=0)
    t_chunks = jnp.split(t, N_GM_CROPS, axis=0)
    total, n = 0.0, 0
    for iq, qc in enumerate(t_chunks):
        for v in range(N_CROPS):
            if v == iq:
                continue
            loss = jnp.sum(-qc * jax.nn.log_softmax(s_chunks[v], axis=-1), axis=-1)
            total = total + loss.mean()
            n += 1
    total = total / n
    batch_center = jnp.sum(teacher_output, axis=0, keepdims=True) / teacher_output.shape[0]
    new_center = center * CENTER_MOMENTUM + batch_center * (1 - CENTER_MOMENTUM)
    return total, new_center


if __name__ == "__main__":
    key = jax.random.PRNGKey(0)
    k1, k2 = jax.random.split(key)

    student_output = jax.random.normal(k1, (N_CROPS * BATCH, OUT_DIM), jnp.float32)
    teacher_output = jax.random.normal(k2, (N_GM_CROPS * BATCH, OUT_DIM), jnp.float32)
    center = jnp.zeros((1, OUT_DIM), jnp.float32)   # register_buffer('center', zeros(1, out_dim))
    epoch = 1

    loss, new_center = contrastive_ce_loss(student_output, teacher_output, center, epoch)
    jax.block_until_ready((loss, new_center))

    ref_loss, ref_center = _reference(student_output, teacher_output, center, epoch)
    assert np.allclose(np.asarray(loss), np.asarray(ref_loss), rtol=1e-4, atol=1e-5), (loss, ref_loss)
    assert np.allclose(np.asarray(new_center), np.asarray(ref_center), rtol=1e-5, atol=1e-6)

    print("KERNEL_OK")
</pallas_src>

<mosaic_0001>
module attributes {stable_mosaic.version = 11 : i64} {
  func.func @_dino_loss_kernel(%arg0: memref<32x32xf32, #tpu.memory_space<vmem>>, %arg1: memref<24x32xf32, #tpu.memory_space<vmem>>, %arg2: memref<1x32xf32, #tpu.memory_space<vmem>>, %arg3: memref<2x32xf32, #tpu.memory_space<vmem>>) attributes {dimension_semantics = [], scalar_prefetch = 0 : i64, scratch_operands = 0 : i64, tpu.core_type = #tpu.core_type<tc>} {
    %c0 = arith.constant 0 : index
    %c0_0 = arith.constant 0 : index
    %0 = vector.load %arg0[%c0, %c0_0] : memref<32x32xf32, #tpu.memory_space<vmem>>, vector<32x32xf32>
    %cst = arith.constant 1.000000e+01 : f32
    %1 = vector.broadcast %cst : f32 to vector<32x32xf32>
    %2 = arith.mulf %0, %1 : vector<32x32xf32>
    %c0_1 = arith.constant 0 : index
    %c0_2 = arith.constant 0 : index
    %3 = vector.load %arg1[%c0_1, %c0_2] : memref<24x32xf32, #tpu.memory_space<vmem>>, vector<24x32xf32>
    %c0_3 = arith.constant 0 : index
    %c0_4 = arith.constant 0 : index
    %4 = vector.load %arg2[%c0_3, %c0_4] : memref<1x32xf32, #tpu.memory_space<vmem>>, vector<1x32xf32>
    %5 = vector.broadcast %4 : vector<1x32xf32> to vector<24x32xf32>
    %6 = arith.subf %3, %5 : vector<24x32xf32>
    %cst_5 = arith.constant 18.181818 : f32
    %7 = vector.broadcast %cst_5 : f32 to vector<24x32xf32>
    %8 = arith.mulf %6, %7 : vector<24x32xf32>
    %cst_6 = arith.constant dense<0xFF800000> : vector<24xf32>
    %9 = vector.multi_reduction <maximumf>, %8, %cst_6 [1] : vector<24x32xf32> to vector<24xf32>
    %10 = vector.shape_cast %9 : vector<24xf32> to vector<24x1xf32>
    %11 = vector.broadcast %10 : vector<24x1xf32> to vector<24x32xf32>
    %12 = arith.subf %8, %11 : vector<24x32xf32>
    %13 = math.exp %12 : vector<24x32xf32>
    %cst_7 = arith.constant dense<0.000000e+00> : vector<24xf32>
    %14 = vector.multi_reduction <add>, %13, %cst_7 [1] : vector<24x32xf32> to vector<24xf32>
    %15 = vector.shape_cast %14 : vector<24xf32> to vector<24x1xf32>
    %16 = tpu.reciprocal %15 {approx = true} : vector<24x1xf32> -> vector<24x1xf32>
    %17 = arith.mulf %15, %16 : vector<24x1xf32>
    %cst_8 = arith.constant 2.000000e+00 : f32
    %18 = vector.broadcast %cst_8 : f32 to vector<24x1xf32>
    %19 = arith.subf %18, %17 : vector<24x1xf32>
    %20 = arith.mulf %16, %19 : vector<24x1xf32>
    %21 = vector.broadcast %20 : vector<24x1xf32> to vector<24x32xf32>
    %22 = arith.mulf %13, %21 : vector<24x32xf32>
    %cst_9 = arith.constant dense<0xFF800000> : vector<32xf32>
    %23 = vector.multi_reduction <maximumf>, %2, %cst_9 [1] : vector<32x32xf32> to vector<32xf32>
    %24 = vector.shape_cast %23 : vector<32xf32> to vector<32x1xf32>
    %25 = vector.broadcast %24 : vector<32x1xf32> to vector<32x32xf32>
    %26 = arith.subf %2, %25 : vector<32x32xf32>
    %27 = math.exp %26 : vector<32x32xf32>
    %cst_10 = arith.constant dense<0.000000e+00> : vector<32xf32>
    %28 = vector.multi_reduction <add>, %27, %cst_10 [1] : vector<32x32xf32> to vector<32xf32>
    %29 = vector.shape_cast %28 : vector<32xf32> to vector<32x1xf32>
    %30 = math.log %29 : vector<32x1xf32>
    %31 = vector.shape_cast %22 : vector<24x32xf32> to vector<3x8x32xf32>
    %32 = vector.shape_cast %26 : vector<32x32xf32> to vector<4x8x32xf32>
    %cst_11 = arith.constant dense<0.000000e+00> : vector<8x32xf32>
    %33 = vector.multi_reduction <add>, %31, %cst_11 [0] : vector<3x8x32xf32> to vector<8x32xf32>
    %cst_12 = arith.constant dense<0.000000e+00> : vector<8x32xf32>
    %34 = vector.multi_reduction <add>, %32, %cst_12 [0] : vector<4x8x32xf32> to vector<8x32xf32>
    %35 = vector.extract_strided_slice %32 {offsets = [0, 0, 0], sizes = [3, 8, 32], strides = [1, 1, 1]} : vector<4x8x32xf32> to vector<3x8x32xf32>
    %36 = arith.mulf %31, %35 : vector<3x8x32xf32>
    %cst_13 = arith.constant dense<0.000000e+00> : vector<8x32xf32>
    %37 = vector.multi_reduction <add>, %36, %cst_13 [0] : vector<3x8x32xf32> to vector<8x32xf32>
    %38 = arith.mulf %33, %34 : vector<8x32xf32>
    %39 = arith.subf %38, %37 : vector<8x32xf32>
    %40 = vector.shape_cast %39 : vector<8x32xf32> to vector<1x8x32xf32>
    %cst_14 = arith.constant dense<0.000000e+00> : vector<1xf32>
    %41 = vector.multi_reduction <add>, %40, %cst_14 [1, 2] : vector<1x8x32xf32> to vector<1xf32>
    %42 = vector.shape_cast %41 : vector<1xf32> to vector<1x1x1xf32>
    %43 = vector.extract %42[0, 0, 0] : f32 from vector<1x1x1xf32>
    %44 = vector.shape_cast %30 : vector<32x1xf32> to vector<1x32x1xf32>
    %cst_15 = arith.constant dense<0.000000e+00> : vector<1xf32>
    %45 = vector.multi_reduction <add>, %44, %cst_15 [1, 2] : vector<1x32x1xf32> to vector<1xf32>
    %46 = vector.shape_cast %45 : vector<1xf32> to vector<1x1x1xf32>
    %47 = vector.extract %46[0, 0, 0] : f32 from vector<1x1x1xf32>
    %48 = vector.extract_strided_slice %30 {offsets = [0, 0], sizes = [24, 1], strides = [1, 1]} : vector<32x1xf32> to vector<24x1xf32>
    %49 = vector.shape_cast %48 : vector<24x1xf32> to vector<1x24x1xf32>
    %cst_16 = arith.constant dense<0.000000e+00> : vector<1xf32>
    %50 = vector.multi_reduction <add>, %49, %cst_16 [1, 2] : vector<1x24x1xf32> to vector<1xf32>
    %51 = vector.shape_cast %50 : vector<1xf32> to vector<1x1x1xf32>
    %52 = vector.extract %51[0, 0, 0] : f32 from vector<1x1x1xf32>
    %cst_17 = arith.constant 3.000000e+00 : f32
    %53 = arith.mulf %cst_17, %47 : f32
    %54 = arith.subf %53, %52 : f32
    %55 = arith.subf %43, %54 : f32
    %cst_18 = arith.constant 0.000000e+00 : f32
    %56 = arith.subf %cst_18, %55 : f32
    %cst_19 = arith.constant 0.013888889 : f32
    %57 = arith.mulf %56, %cst_19 : f32
    %cst_20 = arith.constant dense<0.000000e+00> : vector<32xf32>
    %58 = vector.multi_reduction <add>, %3, %cst_20 [0] : vector<24x32xf32> to vector<32xf32>
    %59 = vector.shape_cast %58 : vector<32xf32> to vector<1x32xf32>
    %cst_21 = arith.constant 0.0416666679 : f32
    %60 = vector.broadcast %cst_21 : f32 to vector<1x32xf32>
    %61 = arith.mulf %59, %60 : vector<1x32xf32>
    %cst_22 = arith.constant 0.899999976 : f32
    %62 = vector.broadcast %cst_22 : f32 to vector<1x32xf32>
    %63 = arith.mulf %4, %62 : vector<1x32xf32>
    %cst_23 = arith.constant 1.000000e-01 : f32
    %64 = vector.broadcast %cst_23 : f32 to vector<1x32xf32>
    %65 = arith.mulf %61, %64 : vector<1x32xf32>
    %66 = arith.addf %63, %65 : vector<1x32xf32>
    %c0_24 = arith.constant 0 : index
    %c0_25 = arith.constant 0 : index
    %67 = vector.load %arg3[%c0_24, %c0_25] : memref<2x32xf32, #tpu.memory_space<vmem>>, vector<1x32xf32>
    tpu.vector_store %arg3[%c0_24, %c0_25], %66 {strides = array<i32>} : memref<2x32xf32, #tpu.memory_space<vmem>>, vector<1x32xf32>,
    %68 = vector.broadcast %57 : f32 to vector<1x32xf32>
    %c1 = arith.constant 1 : index
    %c0_26 = arith.constant 0 : index
    %69 = vector.load %arg3[%c1, %c0_26] : memref<2x32xf32, #tpu.memory_space<vmem>>, vector<1x32xf32>
    tpu.vector_store %arg3[%c1, %c0_26], %68 {strides = array<i32>} : memref<2x32xf32, #tpu.memory_space<vmem>>, vector<1x32xf32>,
    return
  }
}

</mosaic_0001>

<bundles_post_ra>
// kernel: contrastive_ce_loss.1
= control target key start
LH: loop header
LB: loop body
LE: loop exit
PB: predicated region body
PF: predicated region fallthrough
CT: control target
= control target key end

     0   :  { %8 = vsyncpa [#allocation3], 0  ;;  %s430_s0 = inlined_call_operand.hbm [shape: f32[32,32], index: 0, kind: input, shape index: {}]   ;;  %s431_s1 = inlined_call_operand.hbm [shape: f32[24,32], index: 1, kind: input, shape index: {}]   ;;  %s432_s2 = inlined_call_operand.vmem [shape: f32[1,32], index: 2, kind: input, shape index: {}]   ;;  %s433_s3 = inlined_call_operand.vmem [shape: f32[2,32], index: 3, kind: output, shape index: {}]  }
   0x1   :  { %s14_s14 = sshll.u32 %s430_s0, 4  ;;  %s15_s14 = int_to_ptr.hbm [resolvable:$true] %s14_s14 }
   0x2   :  { %9 = vsyncpa [#allocation5], 0  ;;  %s333_s15 = smov [#allocation2]   ;;  %s27_s19 = sshll.u32 %s431_s1, 4  ;;  %s28_s19 = int_to_ptr.hbm [resolvable:$true] %s27_s19 }
   0x3   :  { %s16_s16 = sshll.u32 %s333_s15, 4  ;;  %s334_s20 = smov 128   ;;  %s17_s16 = int_to_ptr.vmem [resolvable:$true] %s16_s16 }
   0x4   :  { %s335_s21 = smov 8   ;;  %s336_s22 = smov [#allocation4]  }
   0x5   :  { %22 = dma.hbm_to_vmem [thread:$0]  %s15_s14, 512, %s17_s16, [#allocation3], %s334_s20, %s334_s20, %s335_s21  }
   0x6   :  { %s29_s23 = sshll.u32 %s336_s22, 4  ;;  %s30_s23 = int_to_ptr.vmem [resolvable:$true] %s29_s23 }
   0x7   :  { %35 = dma.hbm_to_vmem [thread:$0]  %s28_s19, 384, %s30_s23, [#allocation5], %s334_s20, %s334_s20, %s335_s21  }
   0x8   :  { %329 = dma.done.wait [#allocation3], 512  }
   0x9   :  { %330 = vsyncadd [#allocation3], 4294966784 }
   0xa   :  { %331 = dma.done.wait [#allocation5], 384  }
   0xb   :  { %332 = vsyncadd [#allocation5], 4294966912  ;;  %v56_v0 = vld [vmem:[#allocation4 + $0x10] sm:$0xff]  ;;  %v252_v1 = vld [vmem:[%s432_s2] ss:$0 sm:$0xff]  ;;  %vm67_vm0 = vcmask 261120  }
   0xc   :  { %v54_v2 = vld [vmem:[#allocation4] sm:$0xff]  ;;  %v47_v3 = vld [vmem:[#allocation2 + $0x8] sm:$0xff]  ;;  %v63_v5 = vsub.f32 %v56_v0, %v252_v1  ;;  %v220_v9 = vsel %vm67_vm0, %v56_v0, 0.0  ;;  %v48_v12 = vld [vmem:[#allocation2 + $0x10] sm:$0xff]  ;;  %vm186_vm1 = vcmask 7168   ;;  %vm232_vm2 = vcmask 253952  }
   0xd   :  { %v55_v4 = vld [vmem:[#allocation4 + $0x8] sm:$0xff]  ;;  %v61_v6 = vsub.f32 %v54_v2, %v252_v1  ;;  %v217_v7 = vsel %vm67_vm0, %v54_v2, 0.0  ;;  %v51_v8 = vmul.f32 10.0, %v47_v3  ;;  %v46_v17 = vld [vmem:[#allocation2] sm:$0xff]  ;;  %v52_v21 = vmul.f32 10.0, %v48_v12  ;;  %v49_v27 = vld [vmem:[#allocation2 + $0x18] sm:$0xff] }
   0xe   :  { %v62_v10 = vsub.f32 %v55_v4, %v252_v1  ;;  %v218_v11 = vsel %vm67_vm0, %v55_v4, 0.0  ;;  %v66_v13 = vmul.f32 18.181818, %v63_v5  ;;  %v50_v23 = vmul.f32 10.0, %v46_v17 }
   0xf   :  { %v64_v14 = vmul.f32 18.181818, %v61_v6  ;;  %v113_v15 = vsel %vm67_vm0, %v51_v8, -inf  ;;  %v219_v16 = vadd.f32 %v218_v11, %v217_v7  ;;  %v116_v24 = vsel %vm67_vm0, %v52_v21, -inf }
  0x10   :  { %114 = vmax.xlane.f32.xlu2 %v113_v15  ;;  %v74_v18 = vsel %vm67_vm0, %v66_v13, -inf  ;;  %v65_v22 = vmul.f32 18.181818, %v62_v10  ;;  %v110_v26 = vsel %vm67_vm0, %v50_v23, -inf  ;;  %v53_v28 = vmul.f32 10.0, %v49_v27 }
  0x11   :  { %v68_v19 = vsel %vm67_vm0, %v64_v14, -inf  ;;  %v372_v20 = vadd.f32 %v220_v9, %v219_v16  ;;  %75 = vmax.xlane.f32.xlu1 %v74_v18 }
  0x12   :  { %69 = vmax.xlane.f32.xlu0 %v68_v19  ;;  %v71_v25 = vsel %vm67_vm0, %v65_v22, -inf  ;;  %v119_v29 = vsel %vm67_vm0, %v53_v28, -inf }
  0x18   :  { %117 = vmax.xlane.f32.xlu2 %v116_v24 }
  0x19   :  { %111 = vmax.xlane.f32.xlu1 %v110_v26 }
  0x1a   :  { %72 = vmax.xlane.f32.xlu0 %v71_v25 }
  0x22   :  { %120 = vmax.xlane.f32.xlu0 %v119_v29 }
  0x83   :  { %v115_v30 = vpop.xlane.xlu2 %114 }
  0x84   :  { %v76_v31 = vpop.xlane.xlu1 %75  ;;  %v385_v45 = vsub.f32 %v51_v8, %v115_v30 }
  0x85   :  { %v70_v32 = vpop.xlane.xlu0 %69  ;;  %v79_v33 = vsub.f32 %v66_v13, %v76_v31 }
  0x86   :  { %v77_v34 = vsub.f32 %v64_v14, %v70_v32  ;;  %v128_v51 = vmul.f32 1.442695, %v385_v45  ;;  %v160_v15 = vsel %vm67_vm0, %v385_v45, 0.0 }
  0x87   :  { %v84_v35 = vmul.f32 1.442695, %v79_v33 }
  0x88   :  { %v80_v36 = vmul.f32 1.442695, %v77_v34 }
  0x89   :  { %253 = vpow2.f32 %v84_v35 }
  0x8a   :  { %255 = vpow2.f32 %v80_v36 }
  0x8b   :  { %v118_v37 = vpop.xlane.xlu2 %117 }
  0x8c   :  { %v378_v38 = vsub.f32 %v52_v21, %v118_v37  ;;  %v112_v40 = vpop.xlane.xlu1 %111 }
  0x8d   :  { %v73_v39 = vpop.xlane.xlu0 %72  ;;  %v380_v42 = vsub.f32 %v50_v23, %v112_v40 }
  0x8e   :  { %v78_v41 = vsub.f32 %v65_v22, %v73_v39  ;;  %v130_v43 = vmul.f32 1.442695, %v378_v38  ;;  %v162_v27 = vsel %vm67_vm0, %v378_v38, 0.0 }
  0x8f   :  { %v383_v44 = vpop.eup %253  ;;  %v126_v47 = vmul.f32 1.442695, %v380_v42  ;;  %v159_v16 = vsel %vm67_vm0, %v380_v42, 0.0 }
  0x90   :  { %v82_v46 = vmul.f32 1.442695, %v78_v41  ;;  %257 = vpow2.f32 %v130_v43  ;;  %v256_v48 = vpop.eup %255  ;;  %v92_v49 = vsel %vm67_vm0, %v383_v44, 0.0  ;;  %v161_v25 = vadd.f32 %v160_v15, %v159_v16 }
  0x91   :  { %93 = vadd.xlane.f32.xlu0 %v92_v49  ;;  %v86_v50 = vsel %vm67_vm0, %v256_v48, 0.0 }
  0x92   :  { %259 = vpow2.f32 %v82_v46  ;;  %87 = vadd.xlane.f32.xlu1 %v86_v50  ;;  %v163_v34 = vadd.f32 %v162_v27, %v161_v25  ;;  %v57_v27 = vld [vmem:[%s432_s2] sm:$0x1] }
  0x93   :  { %261 = vpow2.f32 %v126_v47 }
  0x94   :  { %263 = vpow2.f32 %v128_v51 }
  0x95   :  { %v121_v52 = vpop.xlane.xlu0 %120 }
  0x96   :  { %v258_v53 = vpop.eup %257  ;;  %v125_v54 = vsub.f32 %v53_v28, %v121_v52 }
  0x97   :  { %v140_v55 = vsel %vm67_vm0, %v258_v53, 0.0 }
  0x98   :  { %v260_v56 = vpop.eup %259  ;;  %v132_v57 = vmul.f32 1.442695, %v125_v54  ;;  %v164_v35 = vsel %vm67_vm0, %v125_v54, 0.0 }
  0x99   :  { %v262_v58 = vpop.eup %261  ;;  %v89_v59 = vsel %vm67_vm0, %v260_v56, 0.0  ;;  %141 = vadd.xlane.f32.xlu0 %v140_v55  ;;  %v165_v51 = vadd.f32 %v164_v35, %v163_v34 }
  0x9a   :  { %265 = vpow2.f32 %v132_v57  ;;  %90 = vadd.xlane.f32.xlu2 %v89_v59  ;;  %v134_v60 = vsel %vm67_vm0, %v262_v58, 0.0  ;;  %v264_v61 = vpop.eup %263 }
  0x9b   :  { %135 = vadd.xlane.f32.xlu1 %v134_v60  ;;  %v137_v63 = vsel %vm67_vm0, %v264_v61, 0.0 }
  0xa0   :  { %v266_v62 = vpop.eup %265 }
  0xa1   :  { %v143_v0 = vsel %vm67_vm0, %v266_v62, 0.0 }
  0xa2   :  { %138 = vadd.xlane.f32.xlu2 %v137_v63 }
  0xa3   :  { %144 = vadd.xlane.f32.xlu1 %v143_v0 }
 0x104   :  { %v94_v1 = vpop.xlane.xlu0 %93 }
 0x105   :  { %267 = vrcp.f32 %v94_v1  ;;  %v88_v2 = vpop.xlane.xlu1 %87 }
 0x106   :  { %269 = vrcp.f32 %v88_v2 }
 0x10b   :  { %v268_v3 = vpop.eup %267 }
 0x10c   :  { %v270_v4 = vpop.eup %269  ;;  %v100_v5 = vmul.f32 %v268_v3, %v94_v1  ;;  %v142_v9 = vpop.xlane.xlu0 %141 }
 0x10d   :  { %v91_v6 = vpop.xlane.xlu2 %90  ;;  %v98_v7 = vmul.f32 %v270_v4, %v88_v2 }
 0x10e   :  { %271 = vrcp.f32 %v91_v6  ;;  %v136_v8 = vpop.xlane.xlu1 %135  ;;  %v103_v10 = vsub.f32 2.0, %v100_v5 }
 0x10f   :  { %v101_v11 = vsub.f32 2.0, %v98_v7  ;;  %273 = vlog2.f32 %v136_v8 }
 0x110   :  { %275 = vlog2.f32 %v142_v9  ;;  %v106_v14 = vmul.f32 %v268_v3, %v103_v10 }
 0x111   :  { %v104_v12 = vmul.f32 %v270_v4, %v101_v11 }
 0x112   :  { %v109_v26 = vmul.f32 %v383_v44, %v106_v14 }
 0x113   :  { %v107_v22 = vmul.f32 %v256_v48, %v104_v12 }
 0x114   :  { %v272_v13 = vpop.eup %271  ;;  %v168_v36 = vmul.f32 %v378_v38, %v109_v26  ;;  %v157_v47 = vsel %vm67_vm0, %v109_v26, 0.0 }
 0x115   :  { %v99_v17 = vmul.f32 %v272_v13, %v91_v6  ;;  %v139_v18 = vpop.xlane.xlu2 %138  ;;  %v274_v21 = vpop.eup %273  ;;  %v166_v30 = vmul.f32 %v380_v42, %v107_v22  ;;  %v154_v39 = vsel %vm67_vm0, %v107_v22, 0.0 }
 0x116   :  { %277 = vlog2.f32 %v139_v18  ;;  %v145_v19 = vpop.xlane.xlu1 %144  ;;  %v276_v24 = vpop.eup %275  ;;  %v147_v29 = vmul.f32 0.6931472, %v274_v21  ;;  %v172_v55 = vsel %vm67_vm0, %v168_v36, 0.0 }
 0x117   :  { %v102_v23 = vsub.f32 2.0, %v99_v17  ;;  %279 = vlog2.f32 %v145_v19  ;;  %v151_v32 = vmul.f32 0.6931472, %v276_v24  ;;  %v169_v38 = vsel %vm67_vm0, %v166_v30, 0.0 }
 0x118   :  { %v187_v44 = vsel %vm186_vm1, %v147_v29, 0.0 }
 0x119   :  { %v105_v28 = vmul.f32 %v272_v13, %v102_v23  ;;  %v190_v49 = vsel %vm186_vm1, %v151_v32, 0.0  ;;  %v222_v13 = vrot.slane %v372_v20, 4 }
 0x11b   :  { %v108_v31 = vmul.f32 %v260_v56, %v105_v28  ;;  %v223_v19 = vadd.f32 %v222_v13, %v372_v20  ;;  %v229_v28 = vmul.f32 0.9, %v57_v27 }
 0x11c   :  { %v278_v33 = vpop.eup %277 }
 0x11d   :  { %v280_v37 = vpop.eup %279  ;;  %v155_v40 = vsel %vm67_vm0, %v108_v31, 0.0  ;;  %v167_v41 = vmul.f32 %v385_v45, %v108_v31  ;;  %v149_v43 = vmul.f32 0.6931472, %v278_v33  ;;  %v224_v22 = vrot.slane %v223_v19, 2 }
 0x11e   :  { %v153_v42 = vmul.f32 0.6931472, %v280_v37  ;;  %v156_v46 = vadd.f32 %v155_v40, %v154_v39 }
 0x11f   :  { %v188_v48 = vsel %vm186_vm1, %v149_v43, 0.0  ;;  %v170_v50 = vsel %vm67_vm0, %v167_v41, 0.0  ;;  %v225_v23 = vadd.f32 %v224_v22, %v223_v19 }
 0x120   :  { %v189_v52 = vadd.f32 %v188_v48, %v187_v44  ;;  %v158_v53 = vadd.f32 %v157_v47, %v156_v46  ;;  %v171_v54 = vadd.f32 %v170_v50, %v169_v38  ;;  %v192_v45 = vsel %vm186_vm1, %v153_v42, 0.0 }
 0x121   :  { %v226_v24 = vrot.slane %v225_v23, 1 }
 0x122   :  { %v191_v56 = vadd.f32 %v190_v49, %v189_v52  ;;  %v173_v57 = vadd.f32 %v172_v55, %v171_v54  ;;  %v174_v58 = vmul.f32 %v165_v51, %v158_v53 }
 0x123   :  { %v227_v25 = vadd.f32 %v226_v24, %v225_v23 }
 0x124   :  { %203 = vadd.xlane.f32.xlu1 %v191_v56  ;;  %v193_v59 = vadd.f32 %v192_v45, %v191_v56  ;;  %v175_v60 = vsub.f32 %v174_v58, %v173_v57 }
 0x125   :  { %v228_v26 = vmul.f32 0.041666668, %v227_v25 }
 0x126   :  { %194 = vadd.xlane.f32.xlu0 %v193_v59  ;;  %v176_v61 = vsel %vm67_vm0, %v175_v60, 0.0 }
 0x127   :  { %177 = vadd.xlane.f32.xlu2 %v176_v61  ;;  %v230_v29 = vmul.f32 0.1, %v228_v26 }
 0x129   :  { %v231_v30 = vadd.f32 %v230_v29, %v229_v28 }
 0x12b   :  { %233 = vst.msk [vmem:[%s433_s3] sm:$0x1] %vm232_vm2, %v231_v30 }
 0x197   :  { %v204_v62 = vpop.xlane.xlu1 %203 }
 0x198   :  { %v205_v63 = vrot.slane %v204_v62, 4 }
 0x199   :  { %v195_v0 = vpop.xlane.xlu0 %194 }
 0x19a   :  { %v206_v1 = vadd.f32 %v205_v63, %v204_v62  ;;  %v196_v2 = vrot.slane %v195_v0, 4  ;;  %v178_v3 = vpop.xlane.xlu2 %177 }
 0x19b   :  { %v179_v4 = vrot.slane %v178_v3, 4 }
 0x19c   :  { %v207_v5 = vrot.slane %v206_v1, 2  ;;  %v197_v6 = vadd.f32 %v196_v2, %v195_v0 }
 0x19d   :  { %v180_v7 = vadd.f32 %v179_v4, %v178_v3 }
 0x19e   :  { %v198_v8 = vrot.slane %v197_v6, 2  ;;  %v208_v9 = vadd.f32 %v207_v5, %v206_v1 }
 0x19f   :  { %v181_v10 = vrot.slane %v180_v7, 2 }
 0x1a0   :  { %v199_v11 = vadd.f32 %v198_v8, %v197_v6  ;;  %v209_v16 = vrot.slane %v208_v9, 1 }
 0x1a1   :  { %v182_v12 = vadd.f32 %v181_v10, %v180_v7 }
 0x1a2   :  { %v200_v14 = vrot.slane %v199_v11, 1  ;;  %v210_v21 = vadd.f32 %v209_v16, %v208_v9 }
 0x1a3   :  { %v183_v15 = vrot.slane %v182_v12, 1 }
 0x1a4   :  { %v201_v17 = vadd.f32 %v200_v14, %v199_v11 }
 0x1a5   :  { %v184_v18 = vadd.f32 %v183_v15, %v182_v12 }
 0x1a7   :  { %242 = vpush %v184_v18 }
 0x1a8   :  { %244 = vpush %v201_v17 }
 0x1a9   :  { %246 = vpush %v210_v21 }
 0x1d8   :  { %s243_s28 = spop %242 }
 0x1d9   :  { %s245_s29 = spop %244 }
 0x1da   :  { %s212_s30 = smul.f32 3.0, %s245_s29  ;;  %s247_s4 = spop %246 }
 0x1dc   :  { %s213_s5 = ssub.f32 %s212_s30, %s247_s4 }
 0x1de   :  { %s214_s6 = ssub.f32 %s243_s28, %s213_s5 }
 0x1e0   :  { %s215_s7 = ssub.f32 0.0, %s214_s6 }
 0x1e2   :  { %s216_s8 = smul.f32 0.013888889, %s215_s7 }
 0x1e4   :  { %v234_v20 = vstv %s216_s8 }
 0x1e5   :  { %235 = vst.msk [vmem:[%s433_s3 + $0x1] sm:$0x1] %vm232_vm2, %v234_v20 }
 0x1e6   :  { %240 = vsyncpa [#allocation3], 1 }
 0x1e7   :  { %241 = vsyncpa [#allocation5], 1 }

</bundles_post_ra>
